<compile_context>
chip_gen: v7x
topology: tpu7x:2x2x1
jax: 0.10.0
libtpu: 0.0.40
codegen_flags: <defaults>
</compile_context>

<pallas_src>
import math

import jax
import jax.numpy as jnp
from jax.experimental import pallas as pl
from jax.experimental.pallas import tpu as pltpu

_LANE = 128
_MAX_COLS = 1024
# Per-pass tile targets (elements); additionally clamped by the VMEM budget.
_P1_TARGET_ELEMS = 2 * 1024 * 1024   # pass 1 moves input only   (~8 MiB f32)
_P2_TARGET_ELEMS = 1 * 1024 * 1024   # pass 2 moves input+output (~4+4 MiB f32)


def _vmem_physical_bytes():
    """Per-core VMEM capacity (generation aware); conservative fallback."""
    try:
        return int(pltpu.get_tpu_info().vmem_capacity_bytes)
    except Exception:
        return 64 << 20   # v7x per-TensorCore VMEM (smallest current gen)


def _sublane_multiple(dtype):
    """Minimum row-tile multiple so packed sub-32-bit dtypes keep full,
    unmasked vector loads/stores (bf16 packs 16 rows/vreg, int8 packs 32)."""
    return max(8, 32 // jnp.dtype(dtype).itemsize)


def _reduce_dtype(dtype):
    """Dtype for the min/max reduction: wide signed ints stay integer so the
    extremes are exact; every other input dtype is exact in f32."""
    dtype = jnp.dtype(dtype)
    if dtype.kind == "i" and dtype.itemsize >= 4:
        return jnp.int32
    return jnp.float32


def _pick_cols(total, max_cols=_MAX_COLS):
    """Largest power-of-two multiple of 128 (<= max_cols) dividing `total`."""
    cols, c = 0, _LANE
    while c <= max_cols and total % c == 0:
        cols = c
        c *= 2
    return cols


def _pick_tile_rows(rows, cols, min_rows, max_tile_elems):
    """Largest power-of-two multiple of `min_rows` with tile_rows*cols within
    `max_tile_elems`, keeping >= 4 grid steps when there is enough work
    (feeds both v7x TensorCores and the double-buffered pipeline)."""
    if rows <= min_rows:
        return rows                                  # single full-extent block
    limit = max(min_rows, min(max_tile_elems // cols, rows))
    if rows >= 4 * min_rows:
        limit = min(limit, max(min_rows, rows // 4))  # keep num_tiles >= 4
    tile = min_rows
    while tile * 2 <= limit:
        tile *= 2
    return tile


# ---------------------------------------------------------------------------
# kernels
# ---------------------------------------------------------------------------
def _make_minmax_kernel(rows, tile_rows, part_dtype, needs_mask):
    """Pass 1: per-tile partial (min, max) -> one (1, 2) SMEM block per step."""
    part_dtype = jnp.dtype(part_dtype)
    if jnp.issubdtype(part_dtype, jnp.floating):
        lo = part_dtype.type(-jnp.inf)
        hi = part_dtype.type(jnp.inf)
    else:
        info = jnp.iinfo(part_dtype)
        lo = part_dtype.type(info.min)
        hi = part_dtype.type(info.max)

    def kernel(x_ref, part_ref):
        # Cast in-kernel (VPU slack makes this free); no wrapper-side astype.
        x = x_ref[...].astype(part_dtype)
        if needs_mask:
            # Remainder tile hangs off the array end; OOB rows hold garbage,
            # mask them out of the reduction.
            valid = rows - pl.program_id(0) * tile_rows
            row_ids = jax.lax.broadcasted_iota(jnp.int32, x.shape, 0)
            keep = row_ids < valid
            part_ref[0, 0] = jnp.min(jnp.where(keep, x, hi))
            part_ref[0, 1] = jnp.max(jnp.where(keep, x, lo))
        else:
            part_ref[0, 0] = jnp.min(x)
            part_ref[0, 1] = jnp.max(x)

    return kernel


def _make_rescale_kernel(out_min, out_range):
    """Pass 2: combine the (tiny) partials in-kernel and apply
    y = x * scale + offset elementwise."""
    out_min = float(out_min)
    out_range = float(out_range)

    def kernel(part_ref, x_ref, o_ref):
        p = part_ref[...]                              # (num_tiles_1, 2)
        img_min = jnp.min(p[:, 0:1]).astype(jnp.float32)
        img_max = jnp.max(p[:, 1:2]).astype(jnp.float32)
        scale = jnp.float32(out_range) / (img_max - img_min)
        offset = jnp.float32(out_min) - img_min * scale
        x = x_ref[...].astype(jnp.float32)
        o_ref[...] = (x * scale + offset).astype(o_ref.dtype)

    return kernel


def _make_fused_kernel(out_min, out_range, part_dtype):
    """Single-call path for tensors that fit in VMEM: global min/max and the
    rescale in one body (one launch, one fewer HBM read of the tensor)."""
    out_min = float(out_min)
    out_range = float(out_range)
    part_dtype = jnp.dtype(part_dtype)

    def kernel(x_ref, o_ref):
        xr = x_ref[...].astype(part_dtype)
        img_min = jnp.min(xr).astype(jnp.float32)
        img_max = jnp.max(xr).astype(jnp.float32)
        scale = jnp.float32(out_range) / (img_max - img_min)
        offset = jnp.float32(out_min) - img_min * scale
        if part_dtype == jnp.dtype(jnp.float32):
            x = xr
        else:
            x = x_ref[...].astype(jnp.float32)
        o_ref[...] = (x * scale + offset).astype(o_ref.dtype)

    return kernel


# ---------------------------------------------------------------------------
# module
# ---------------------------------------------------------------------------
class Rescale:
    """JAX/Pallas port of the PyTorch Rescale module."""

    def __init__(self, min, max):  # noqa: A002 - match the torch signature
        self.min = float(min)
        self.range = float(max - min)

    def __call__(self, img, *, _force_two_pass=False):
        orig_shape = img.shape
        in_dtype = img.dtype
        # PyTorch true division promotes integer tensors to the default float.
        out_dtype = (in_dtype if jnp.issubdtype(in_dtype, jnp.floating)
                     else jnp.float32)
        part_dtype = _reduce_dtype(in_dtype)
        total = math.prod(orig_shape)
        in_b = jnp.dtype(in_dtype).itemsize
        out_b = jnp.dtype(out_dtype).itemsize

        phys_vmem = _vmem_physical_bytes()
        vmem_limit = min(int(phys_vmem * 0.6), 100 << 20)
        pipeline_budget = min(int(phys_vmem * 0.35), 48 << 20)

        # ---------------- fused single-kernel fast path --------------------
        fused_budget = min(phys_vmem // 4, 24 << 20)
        if (not _force_two_pass) and total * (in_b + out_b + 4) <= fused_budget:
            cols = _pick_cols(total)
            x2d = (img.reshape(total // cols, cols) if cols
                   else img.reshape(1, total))
            out2d = pl.pallas_call(
                _make_fused_kernel(self.min, self.range, part_dtype),
                out_shape=jax.ShapeDtypeStruct(x2d.shape, out_dtype),
                in_specs=[pl.BlockSpec(memory_space=pltpu.MemorySpace.VMEM)],
                out_specs=pl.BlockSpec(memory_space=pltpu.MemorySpace.VMEM),
                compiler_params=pltpu.CompilerParams(
                    vmem_limit_bytes=vmem_limit),
            )(x2d)
            return out2d.reshape(orig_shape)

        # ---------------- two-pass tiled path -------------------------------
        cols = _pick_cols(total)
        padded = False
        if cols == 0:
            # No multiple-of-128 factor: edge-pad the flat view (edge values
            # cannot perturb min/max); the pad is sliced back off at the end.
            cols = 512
            pad = (-total) % cols
            flat = jnp.pad(img.reshape(total), (0, pad), mode="edge")
            x2d = flat.reshape(-1, cols)
            padded = True
        else:
            x2d = img.reshape(total // cols, cols)
        rows = x2d.shape[0]

        min_rows = max(_sublane_multiple(in_dtype), _sublane_multiple(out_dtype))

        # Per-pass tile caps: double-buffered footprint (+ f32 temps) must fit
        # the generation-aware pipeline budget.
        p1_elems = max(1, min(_P1_TARGET_ELEMS,
                              pipeline_budget // (2 * in_b + 8)))
        p2_elems = max(1, min(_P2_TARGET_ELEMS,
                              pipeline_budget // (2 * in_b + 2 * out_b + 8)))
        tile_rows_1 = _pick_tile_rows(rows, cols, min_rows, p1_elems)
        tile_rows_2 = _pick_tile_rows(rows, cols, min_rows, p2_elems)
        num_tiles_1 = -(-rows // tile_rows_1)
        num_tiles_2 = -(-rows // tile_rows_2)

        # ---- pass 1: per-tile partial (min, max), parallel grid -----------
        partials = pl.pallas_call(
            _make_minmax_kernel(rows, tile_rows_1, part_dtype,
                                rows % tile_rows_1 != 0),
            out_shape=jax.ShapeDtypeStruct((num_tiles_1, 2), part_dtype),
            grid_spec=pltpu.PrefetchScalarGridSpec(
                num_scalar_prefetch=0,
                grid=(num_tiles_1,),
                in_specs=[pl.BlockSpec((tile_rows_1, cols), lambda i: (i, 0))],
                out_specs=pl.BlockSpec((1, 2), lambda i: (i, 0),
                                       memory_space=pltpu.MemorySpace.SMEM),
            ),
            compiler_params=pltpu.CompilerParams(
                dimension_semantics=("parallel",),
                vmem_limit_bytes=vmem_limit),
        )(x2d)

        # ---- pass 2: combine partials in-kernel + elementwise rescale -----
        out2d = pl.pallas_call(
            _make_rescale_kernel(self.min, self.range),
            out_shape=jax.ShapeDtypeStruct((rows, cols), out_dtype),
            grid_spec=pltpu.PrefetchScalarGridSpec(
                num_scalar_prefetch=0,
                grid=(num_tiles_2,),
                in_specs=[
                    # partials: tiny, same block index every step -> one fetch
                    pl.BlockSpec((num_tiles_1, 2), lambda i: (0, 0)),
                    pl.BlockSpec((tile_rows_2, cols), lambda i: (i, 0)),
                ],
                out_specs=pl.BlockSpec((tile_rows_2, cols), lambda i: (i, 0)),
            ),
            compiler_params=pltpu.CompilerParams(
                dimension_semantics=("parallel",),
                vmem_limit_bytes=vmem_limit),
        )(partials, x2d)

        if padded:
            return out2d.reshape(-1)[:total].reshape(orig_shape)
        return out2d.reshape(orig_shape)


# ---------------------------------------------------------------------------
# demo / self-check
# ---------------------------------------------------------------------------
def _reference(x, out_min, out_max):
    xf = x.astype(jnp.float32)
    mn, mx = jnp.min(xf), jnp.max(xf)
    return (xf - mn) / (mx - mn) * (out_max - out_min) + out_min


if __name__ == "__main__":
    key = jax.random.PRNGKey(0)
    k1, k2, k3, k4, k5 = jax.random.split(key, 5)
    module = Rescale(min=-1.0, max=1.0)

    # 1) small NCHW tensor -> fused single-kernel fast path
    x1 = jax.random.normal(k1, (2, 4, 16, 16), dtype=jnp.float32) * 3.0 + 1.5
    o1 = jax.block_until_ready(module(x1))
    assert o1.shape == x1.shape and o1.dtype == x1.dtype
    assert jnp.allclose(o1, _reference(x1, -1.0, 1.0), atol=1e-5, rtol=1e-5)

    # 2) two-pass tiled path (exact tiling, 4 tiles per pass)
    x2 = jax.random.normal(k2, (4, 4, 64, 64), dtype=jnp.float32) * 2.0 - 0.7
    o2 = jax.block_until_ready(module(x2, _force_two_pass=True))
    assert jnp.allclose(o2, _reference(x2, -1.0, 1.0), atol=1e-5, rtol=1e-5)

    # 3) two-pass path with a masked remainder tile (rows not divisible)
    x3 = jax.random.normal(k3, (3, 4, 32, 32), dtype=jnp.float32) * 5.0
    o3 = jax.block_until_ready(module(x3, _force_two_pass=True))
    assert jnp.allclose(o3, _reference(x3, -1.0, 1.0), atol=1e-5, rtol=1e-5)

    # 4) two-pass path via edge-padded fallback (total not multiple of 128)
    x4 = jax.random.normal(k4, (2, 3, 5, 7), dtype=jnp.float32)
    o4 = jax.block_until_ready(module(x4, _force_two_pass=True))
    assert o4.shape == x4.shape
    assert jnp.allclose(o4, _reference(x4, -1.0, 1.0), atol=1e-5, rtol=1e-5)

    # 5) bf16 input, two-pass path (sublane-packing-aware 16-row tiles)
    x5 = (jax.random.normal(k5, (4, 4, 64, 64), dtype=jnp.float32)
          ).astype(jnp.bfloat16)
    o5 = jax.block_until_ready(module(x5, _force_two_pass=True))
    assert o5.dtype == jnp.bfloat16
    ref5 = _reference(x5, -1.0, 1.0).astype(jnp.bfloat16)
    assert jnp.allclose(o5.astype(jnp.float32), ref5.astype(jnp.float32),
                        atol=3e-2, rtol=3e-2)

    print("KERNEL_OK")
</pallas_src>

<mosaic_0001>
module attributes {stable_mosaic.version = 11 : i64} {
  func.func @kernel(%arg0: memref<2x1024xf32, #tpu.memory_space<vmem>>, %arg1: memref<2x1024xf32, #tpu.memory_space<vmem>>) attributes {dimension_semantics = [], scalar_prefetch = 0 : i64, scratch_operands = 0 : i64, tpu.core_type = #tpu.core_type<tc>} {
    %c0 = arith.constant 0 : index
    %c0_0 = arith.constant 0 : index
    %0 = vector.load %arg0[%c0, %c0_0] : memref<2x1024xf32, #tpu.memory_space<vmem>>, vector<2x1024xf32>
    %1 = vector.shape_cast %0 : vector<2x1024xf32> to vector<1x2x1024xf32>
    %cst = arith.constant dense<0x7F800000> : vector<1xf32>
    %2 = vector.multi_reduction <minimumf>, %1, %cst [1, 2] : vector<1x2x1024xf32> to vector<1xf32>
    %3 = vector.shape_cast %2 : vector<1xf32> to vector<1x1x1xf32>
    %4 = vector.extract %3[0, 0, 0] : f32 from vector<1x1x1xf32>
    %5 = vector.shape_cast %0 : vector<2x1024xf32> to vector<1x2x1024xf32>
    %cst_1 = arith.constant dense<0xFF800000> : vector<1xf32>
    %6 = vector.multi_reduction <maximumf>, %5, %cst_1 [1, 2] : vector<1x2x1024xf32> to vector<1xf32>
    %7 = vector.shape_cast %6 : vector<1xf32> to vector<1x1x1xf32>
    %8 = vector.extract %7[0, 0, 0] : f32 from vector<1x1x1xf32>
    %9 = arith.subf %8, %4 : f32
    %cst_2 = arith.constant 2.000000e+00 : f32
    %10 = arith.divf %cst_2, %9 : f32
    %11 = arith.mulf %4, %10 : f32
    %cst_3 = arith.constant -1.000000e+00 : f32
    %12 = arith.subf %cst_3, %11 : f32
    %13 = vector.broadcast %10 : f32 to vector<2x1024xf32>
    %14 = arith.mulf %0, %13 : vector<2x1024xf32>
    %15 = vector.broadcast %12 : f32 to vector<2x1024xf32>
    %16 = arith.addf %14, %15 : vector<2x1024xf32>
    %c0_4 = arith.constant 0 : index
    %c0_5 = arith.constant 0 : index
    %17 = vector.load %arg1[%c0_4, %c0_5] : memref<2x1024xf32, #tpu.memory_space<vmem>>, vector<2x1024xf32>
    tpu.vector_store %arg1[%c0_4, %c0_5], %16 {strides = array<i32>} : memref<2x1024xf32, #tpu.memory_space<vmem>>, vector<2x1024xf32>,
    return
  }
}

</mosaic_0001>

<bundles_post_ra>
// kernel: tpu_custom_call.1
= control target key start
LH: loop header
LB: loop body
LE: loop exit
PB: predicated region body
PF: predicated region fallthrough
CT: control target
= control target key end

     0   :  { %6 = vsyncpa [#allocation3], 0  ;;  %s272_s0 = inlined_call_operand.hbm [shape: f32[2,1024], index: 0, kind: input, shape index: {}]   ;;  %s273_s1 = inlined_call_operand.hbm [shape: f32[2,1024], index: 1, kind: output, shape index: {}]  }
   0x1   :  { %7 = vsyncpa [#allocation4], 0  ;;  %s207_s6 = smov [#allocation2]   ;;  %s159_s10 = scalar_lea.hbm %s272_s0, 256 }
   0x2   :  { %s14_s7 = sshll.u32 %s207_s6, 4  ;;  %p160_p0 = scmp.ne.s32.totalorder %s272_s0, %s159_s10  ;;  %s15_s7 = int_to_ptr.vmem [resolvable:$true] %s14_s7 }
   0x3   :  { %p163_p1 = scmp.lt.u32.totalorder %s159_s10, %s272_s0 }
   0x5   :  { %p165_p2 = pnand %p163_p1, %p160_p0 }
   0x7   :  { %168 = shalt.err (!%p165_p2)
}
   0x8   :  { %s169_s15 = scalar_lea.vmem %s15_s7, 256  ;;  %p174_p4 = scmp.lt.s32.totalorder %s15_s7, %s15_s7 }
   0x9   :  { %p170_p3 = scmp.ne.s32.totalorder %s15_s7, %s169_s15  ;;  %p175_p5 = scmp.lt.s32.totalorder %s169_s15, %s169_s15 }
   0xb   :  { %p176_p6 = por %p175_p5, %p174_p4 }
   0xd   :  { %p177_p7 = pnand %p176_p6, %p170_p3 }
   0xf   :  { %180 = shalt.err (!%p177_p7)
}
  0x10   :  { %17 = dma.hbm_to_vmem [thread:$0]  %s272_s0, 256, %s15_s7, [#allocation3]  }
  0x11   :  { %203 = dma.done.wait [#allocation3], 256  }
  0x12   :  { %204 = vsyncadd [#allocation3], 4294967040  ;;  %v29_v0 = vlaneseq  ;;  %v208_v1 = vmov 1983009808   ;;  %v232_v6 = vld [vmem:[#allocation2] sm:$0xff]  ;;  %v234_v7 = vld [vmem:[#allocation2 + $0x8] sm:$0xff] }
  0x13   :  { %v27_v2 = vunpack.c.l.s4 %v208_v1  ;;  %vm67_vm0 = vcmask 1041408   ;;  %v25_v8 = vcombine.high %v232_v6, %v232_v6  ;;  %v42_v10 = vcombine.high %v234_v7, %v234_v7  ;;  %s209_s24 = smov [#allocation5]  }
  0x14   :  { %v30_v3 = vshrl.u32 %v29_v0, 7  ;;  %s137_s25 = sshll.u32 %s209_s24, 4  ;;  %s138_s25 = int_to_ptr.vmem [resolvable:$true] %s137_s25 }
  0x15   :  { %v28_v4 = vunpack.c.0.s8 %v27_v2  ;;  %s181_s26 = scalar_lea.vmem %s138_s25, 256  ;;  %p186_p9 = scmp.lt.s32.totalorder %s138_s25, %s138_s25 }
  0x16   :  { %p182_p8 = scmp.ne.s32.totalorder %s138_s25, %s181_s26  ;;  %p187_p10 = scmp.lt.s32.totalorder %s181_s26, %s181_s26 }
  0x17   :  { %v31_v5 = vsub.s32 %v28_v4, %v30_v3 }
  0x18   :  { %p188_p11 = por %p187_p10, %p186_p9 }
  0x19   :  { %v32_v9 = vrot.slane %v232_v6, %v31_v5  ;;  %v49_v11 = vrot.slane %v234_v7, %v31_v5  ;;  %v39_v12 = vrot.slane %v25_v8, %v31_v5  ;;  %v56_v14 = vrot.slane %v42_v10, %v31_v5 }
  0x1a   :  { %p189_p12 = pnand %p188_p11, %p182_p8 }
  0x1b   :  { %v40_v13 = vcombine.high %v32_v9, %v32_v9  ;;  %v57_v15 = vcombine.high %v49_v11, %v49_v11  ;;  %v68_v16 = vsel %vm67_vm0, %v32_v9, inf  ;;  %v72_v17 = vsel %vm67_vm0, %v49_v11, inf }
  0x1c   :  { %v92_v18 = vsel %vm67_vm0, %v32_v9, -inf  ;;  %v96_v19 = vsel %vm67_vm0, %v49_v11, -inf  ;;  %v41_v20 = vcombine.high %v39_v12, %v39_v12  ;;  %v58_v21 = vcombine.high %v56_v14, %v56_v14 }
  0x1d   :  { %v69_v22 = vsel %vm67_vm0, %v40_v13, inf  ;;  %v70_v23 = vsel %vm67_vm0, %v39_v12, inf  ;;  %v73_v24 = vmin.f32 %v68_v16, %v72_v17  ;;  %v74_v25 = vsel %vm67_vm0, %v57_v15, inf }
  0x1e   :  { %v76_v26 = vsel %vm67_vm0, %v56_v14, inf  ;;  %v93_v27 = vsel %vm67_vm0, %v40_v13, -inf  ;;  %v71_v28 = vsel %vm67_vm0, %v41_v20, inf  ;;  %v75_v29 = vmin.f32 %v69_v22, %v74_v25 }
  0x1f   :  { %v77_v30 = vmin.f32 %v70_v23, %v76_v26  ;;  %v78_v31 = vsel %vm67_vm0, %v58_v21, inf  ;;  %v94_v33 = vsel %vm67_vm0, %v39_v12, -inf  ;;  %v95_v34 = vsel %vm67_vm0, %v41_v20, -inf }
  0x20   :  { %v79_v32 = vmin.f32 %v71_v28, %v78_v31  ;;  %v97_v35 = vmax.f32 %v92_v18, %v96_v19  ;;  %v80_v36 = vmin.f32 %v73_v24, %v75_v29  ;;  %v98_v37 = vsel %vm67_vm0, %v57_v15, -inf }
  0x21   :  { %v100_v38 = vsel %vm67_vm0, %v56_v14, -inf  ;;  %v102_v39 = vsel %vm67_vm0, %v58_v21, -inf  ;;  %v99_v41 = vmax.f32 %v93_v27, %v98_v37 }
  0x22   :  { %v81_v40 = vmin.f32 %v77_v30, %v79_v32  ;;  %v101_v42 = vmax.f32 %v94_v33, %v100_v38  ;;  %v103_v43 = vmax.f32 %v95_v34, %v102_v39 }
  0x23   :  { %v104_v45 = vmax.f32 %v97_v35, %v99_v41 }
  0x24   :  { %v82_v44 = vmin.f32 %v80_v36, %v81_v40  ;;  %v105_v46 = vmax.f32 %v101_v42, %v103_v43 }
  0x26   :  { %83 = vmin.xlane.f32.xlu0 %v82_v44  ;;  %v106_v47 = vmax.f32 %v104_v45, %v105_v46 }
  0x2a   :  { %107 = vmax.xlane.f32.xlu0 %v106_v47 }
  0xb3   :  { %v84_v48 = vpop.xlane.xlu0 %83 }
  0xb4   :  { %v85_v49 = vrot.slane %v84_v48, 4 }
  0xb6   :  { %v86_v50 = vmin.f32 %v84_v48, %v85_v49 }
  0xb7   :  { %v108_v51 = vpop.xlane.xlu0 %107 }
  0xb8   :  { %v87_v52 = vrot.slane %v86_v50, 2  ;;  %v109_v53 = vrot.slane %v108_v51, 4 }
  0xba   :  { %v110_v54 = vmax.f32 %v108_v51, %v109_v53  ;;  %v88_v55 = vmin.f32 %v86_v50, %v87_v52 }
  0xbc   :  { %v111_v56 = vrot.slane %v110_v54, 2  ;;  %v89_v57 = vrot.slane %v88_v55, 1 }
  0xbe   :  { %v112_v58 = vmax.f32 %v110_v54, %v111_v56  ;;  %v90_v59 = vmin.f32 %v88_v55, %v89_v57 }
  0xc0   :  { %146 = vpush %v90_v59  ;;  %v113_v60 = vrot.slane %v112_v58, 1 }
  0xc2   :  { %v114_v61 = vmax.f32 %v112_v58, %v113_v60 }
  0xc4   :  { %148 = vpush %v114_v61 }
  0xf1   :  { %s147_s0 = spop %146 }
  0xf5   :  { %s149_s18 = spop %148 }
  0xf6   :  { %s116_s19 = ssub.f32 %s149_s18, %s147_s0 }
  0xf8   :  { %v117_v62 = vstv %s116_s19 }
  0xf9   :  { %157 = vrcp.f32 %v117_v62 }
 0x103   :  { %v158_v63 = vpop.eup %157 }
 0x104   :  { %150 = vpush %v158_v63 }
 0x135   :  { %s151_s20 = spop %150 }
 0x136   :  { %s120_s21 = smul.f32 2.0, %s151_s20 }
 0x138   :  { %s121_s22 = smul.f32 %s147_s0, %s120_s21  ;;  %v123_v0 = vstv %s120_s21 }
 0x139   :  { %v124_v1 = vmul.f32 %v123_v0, %v232_v6  ;;  %v125_v2 = vmul.f32 %v123_v0, %v234_v7 }
 0x13a   :  { %s122_s23 = ssub.f32 -1.0, %s121_s22 }
 0x13c   :  { %v126_v3 = vstv %s122_s23 }
 0x13d   :  { %v127_v4 = vadd.f32 %v126_v3, %v124_v1  ;;  %v128_v5 = vadd.f32 %v126_v3, %v125_v2 }
 0x13f   :  { %129 = vst [vmem:[#allocation5] sm:$0xff] %v127_v4  ;;  %130 = vst [vmem:[#allocation5 + $0x8] sm:$0xff] %v128_v5 }
 0x140   :  { %192 = shalt.err (!%p189_p12)
}
 0x141   :  { %s193_s29 = scalar_lea.hbm %s273_s1, 256 }
 0x142   :  { %p194_p13 = scmp.ne.s32.totalorder %s273_s1, %s193_s29  ;;  %p197_p0 = scmp.lt.u32.totalorder %s193_s29, %s273_s1 }
 0x144   :  { %p199_p1 = pnand %p197_p0, %p194_p13 }
 0x146   :  { %202 = shalt.err (!%p199_p1)
}
 0x147   :  { %140 = dma.vmem_to_hbm [thread:$0]  %s138_s25, 256, %s273_s1, [#allocation4]  }
 0x148   :  { %205 = dma.done.wait [#allocation4], 256  }
 0x149   :  { %206 = vsyncadd [#allocation4], 4294967040 }
 0x14a   :  { %144 = vsyncpa [#allocation3], 1 }
 0x14b   :  { %145 = vsyncpa [#allocation4], 1 }

</bundles_post_ra>
